<compile_context>
chip_gen: v7x
topology: tpu7x:2x2x1
jax: 0.10.0
libtpu: 0.0.40
codegen_flags: <defaults>
</compile_context>

<pallas_src>
import functools

import numpy as np
import jax
import jax.numpy as jnp
from jax.experimental import pallas as pl
from jax.experimental.pallas import tpu as pltpu

# ----------------------------- config ---------------------------------------
Z_LEN = 16
G_DIM = 8
BLOCKS = 2
IMGCH = 3
FIRST_FM = 4          # 4x4 feature map after the Linear layer
K = 5
STRIDE = 2
PAD = 2
OUT_PAD = 1
BN_EPS = 1e-5
CONDITIONAL = False   # config.auxclas or config.conditional
COUPLED = False       # config.coupled

# ------------------------- fused-kernel layout -------------------------------
N_BATCH = 2                          # batch size the packed weights assume
HALO = 2                             # zero halo around the 4x4 base grid
PADG = FIRST_FM + 2 * HALO           # 8  : padded base-grid edge
COLS_PER_IMG = PADG * PADG           # 64 : flattened padded grid per sample
MCOLS = N_BATCH * COLS_PER_IMG       # 128: lane-dense column count
C0 = G_DIM * (2 ** BLOCKS)           # 32 : channels after Linear+reshape


# ----------------------------- roll-direction probe ---------------------------
def _probe_roll_convention():
    """True iff pltpu.roll matches jnp.roll (result[i] = x[(i - shift) % n])."""
    def k(x_ref, o_ref):
        o_ref[...] = pltpu.roll(x_ref[...], shift=1, axis=1)
    x = jnp.tile(jnp.arange(128, dtype=jnp.float32)[None, :], (8, 1))
    y = pl.pallas_call(
        k,
        out_shape=jax.ShapeDtypeStruct((8, 128), jnp.float32),
        in_specs=[pl.BlockSpec(memory_space=pltpu.MemorySpace.VMEM)],
        out_specs=pl.BlockSpec(memory_space=pltpu.MemorySpace.VMEM),
    )(x)
    return bool(y[0, 0] == 127.0)


def _roll_amounts(roll_matches_jnp):
    """Static pltpu.roll shifts realizing rolled[:, i] = x[:, (i + off) % 128]
    for the 9 base-grid tap offsets, in the same order as the packed weights."""
    amts = []
    for sh in (-1, 0, 1):
        for sw in (-1, 0, 1):
            off = sh * PADG + sw
            a = (-off) % MCOLS if roll_matches_jnp else off % MCOLS
            amts.append(a)
    return tuple(amts)


# ----------------------------- in-kernel helpers ------------------------------
def _roll_lanes(x, a):
    if a == 0:
        return x
    return pltpu.roll(x, shift=a, axis=1)


def _deconv(x, w, roll_amts):
    """One ConvTranspose layer = ONE long-K MXU matmul.

    x: (rows_in, 128) f32 piece/channel rows on the padded base grid.
    w: (rows_out, 9*rows_in) pre-packed block weights (bf16 or f32).
    The 9 base-shifted copies of x are staged with a sublane-aligned concat
    (rows_in is a multiple of 16), cast to the weight dtype, and contracted in
    a single dot with f32 accumulation.
    """
    staged = jnp.concatenate(
        [_roll_lanes(x, a).astype(w.dtype) for a in roll_amts], axis=0)
    return jnp.dot(w, staged, preferred_element_type=jnp.float32)


def _piece_sum(t, c_step):
    """Circular sum over the piece blocks (rows = P * C, blocks of C rows).

    Implemented as log2(P) aligned sublane shift+adds (all offsets are
    multiples of 8 -> whole-vreg moves, no masking); the shift direction is
    irrelevant for a full circular sum.
    """
    rows = t.shape[0]
    shift = c_step
    while shift < rows:
        t = t + jnp.concatenate([t[shift:, :], t[:shift, :]], axis=0)
        shift *= 2
    return t


def _bn_relu(acc, gamma, beta, mask, c_step, inv_count):
    """Training-mode BatchNorm2d + ReLU on the piece representation.

    Per-channel stats over all pieces (sublane shift-reduce), both samples and
    the interior base positions (lane mask).  Single-pass E[x^2]-mean^2 kept in
    f32.  The trailing `* mask` keeps halo columns exactly zero, which the
    circular lane rolls of the next layer rely on.
    """
    am = acc * mask
    s = jnp.sum(_piece_sum(am, c_step), axis=1, keepdims=True) * inv_count
    e2 = jnp.sum(_piece_sum(am * am, c_step), axis=1, keepdims=True) * inv_count
    inv = jax.lax.rsqrt(e2 - s * s + BN_EPS)
    return jnp.maximum((acc - s) * inv * gamma + beta, 0.0) * mask


# ----------------------------- the fused kernel -------------------------------
def _make_kernel(roll_amts):
    cs1 = G_DIM * 2                                          # channels, block 1
    ic1 = 1.0 / (4 * N_BATCH * FIRST_FM * FIRST_FM)          # 1 / BN count
    cs2 = G_DIM                                              # channels, block 2
    ic2 = 1.0 / (16 * N_BATCH * FIRST_FM * FIRST_FM)

    def kernel(zcols_ref, wlin_ref, g0_ref, b0_ref,
               w1_ref, g1_ref, be1_ref,
               w2_hbm_ref, g2_ref, be2_ref,
               w3_hbm_ref, bias3_ref, mask_ref,
               out_ref,
               w2_buf, w3_buf, dma_sem):
        # ---- stream the two largest weight slabs behind the early compute.
        cp_w2 = pltpu.make_async_copy(w2_hbm_ref, w2_buf, dma_sem.at[0])
        cp_w3 = pltpu.make_async_copy(w3_hbm_ref, w3_buf, dma_sem.at[1])
        cp_w2.start()
        cp_w3.start()

        mask = mask_ref[...]                                 # (1, 128)

        # ---- Linear(z -> 32*4*4, no bias) in base-grid layout, 4 independent
        #      partial accumulators for VALU ILP (no f32 FMA on v5e/v6e).
        zc = zcols_ref[...]                                  # (16, 128)
        parts = []
        for j in range(0, Z_LEN, 4):
            p = wlin_ref[j] * zc[j:j + 1, :]
            for k in range(j + 1, j + 4):
                p = p + wlin_ref[k] * zc[k:k + 1, :]
            parts.append(p)
        x = (parts[0] + parts[1]) + (parts[2] + parts[3])    # (32, 128)

        # ---- BN1d over the batch (the other sample sits 64 lanes away) + ReLU
        sq = x * x
        m = (x + pltpu.roll(x, shift=COLS_PER_IMG, axis=1)) * 0.5
        e2 = (sq + pltpu.roll(sq, shift=COLS_PER_IMG, axis=1)) * 0.5
        inv = jax.lax.rsqrt(e2 - m * m + BN_EPS)
        x = jnp.maximum((x - m) * inv * g0_ref[...] + b0_ref[...], 0.0) * mask

        # ---- ConvT block 1: 32ch@4x4 -> 16ch@8x8  (2x2 pieces x 16ch)
        x = _bn_relu(_deconv(x, w1_ref[...], roll_amts),
                     g1_ref[...], be1_ref[...], mask, cs1, ic1)

        # ---- ConvT block 2: -> 8ch@16x16  (4x4 pieces x 8ch)
        cp_w2.wait()
        x = _bn_relu(_deconv(x, w2_buf[...], roll_amts),
                     g2_ref[...], be2_ref[...], mask, cs2, ic2)

        # ---- last ConvT + bias + tanh: -> 3ch@32x32  (8x8 pieces x 3ch)
        cp_w3.wait()
        out_ref[...] = jnp.tanh(_deconv(x, w3_buf[...], roll_amts)
                                + bias3_ref[...])

    return kernel


# ----------------------------- host-side weight packing -----------------------
def _decompose(q, p):
    """Piece index q+shift in [-1, p] -> (source piece, base-grid shift)."""
    if q < 0:
        return p - 1, -1
    if q >= p:
        return 0, 1
    return q, 0


def _build_shift_weights(w, pieces_in):
    """Pack a ConvTranspose2d weight (Cin, Cout, 5, 5) into 9 block matrices.

    Output: (9, rows_out, rows_in) with rows = piece * C + channel, so that
        R_out = sum_shift  B[shift] @ roll(R_in, shift)
    reproduces the stride-2 ConvT (k=5, pad=2, output_padding=1) in the
    piece / base-grid representation.
    """
    w = np.asarray(w, np.float32)
    cin, cout, kk, _ = w.shape
    p_in, p_out = pieces_in, 2 * pieces_in
    rows_in, rows_out = p_in * p_in * cin, p_out * p_out * cout
    wt = np.transpose(w, (1, 0, 2, 3))                 # (cout, cin, kh, kw)
    B = np.zeros((9, rows_out, rows_in), np.float32)
    for pm in range(p_in):
        for a in range(2):                              # output row phase
            for sh in (-1, 0, 1):
                kh = a + PAD - STRIDE * sh
                if kh < 0 or kh >= kk:
                    continue
                src_h, SH = _decompose(pm + sh, p_in)
                ph_out = 2 * pm + a
                for pn in range(p_in):
                    for b in range(2):                  # output col phase
                        for sw in (-1, 0, 1):
                            kw = b + PAD - STRIDE * sw
                            if kw < 0 or kw >= kk:
                                continue
                            src_w, SW = _decompose(pn + sw, p_in)
                            pw_out = 2 * pn + b
                            sidx = (SH + 1) * 3 + (SW + 1)
                            ro = (ph_out * p_out + pw_out) * cout
                            ri = (src_h * p_in + src_w) * cin
                            B[sidx, ro:ro + cout, ri:ri + cin] += wt[:, :, kh, kw]
    return B


def _embed_base(a):
    """(..., 4, 4) -> (..., 64): embed into the zero-padded 8x8 base grid."""
    a = np.asarray(a, np.float32)
    out = np.zeros(a.shape[:-2] + (PADG, PADG), np.float32)
    out[..., HALO:HALO + FIRST_FM, HALO:HALO + FIRST_FM] = a
    return out.reshape(a.shape[:-2] + (PADG * PADG,))


def _merge_shift_weights(B):
    """(9, rows_out, rows_in) -> (rows_out, 9*rows_in), shift-major columns."""
    return np.transpose(B, (1, 0, 2)).reshape(B.shape[1], 9 * B.shape[2])


def prepare_generator(params, mm_dtype=jnp.bfloat16):
    """Repack PyTorch-layout parameters into the fused-kernel operands."""
    ops = {}
    # Linear weight -> per-(channel, base-position) maps, tiled over the batch.
    wlin = np.asarray(params["w_lin"], np.float32).reshape(Z_LEN, C0, FIRST_FM, FIRST_FM)
    ops["wlin"] = jnp.asarray(np.tile(_embed_base(wlin), (1, 1, N_BATCH)))   # (16,32,128) f32
    g0 = _embed_base(np.asarray(params["bn0_g"], np.float32).reshape(C0, FIRST_FM, FIRST_FM))
    b0 = _embed_base(np.asarray(params["bn0_b"], np.float32).reshape(C0, FIRST_FM, FIRST_FM))
    ops["g0"] = jnp.asarray(np.tile(g0, (1, N_BATCH)))                       # (32, 128)
    ops["b0"] = jnp.asarray(np.tile(b0, (1, N_BATCH)))

    pieces = 1
    for li, blk in enumerate(params["blocks"], start=1):
        w = np.asarray(blk["w"], np.float32)            # (cin, cout, 5, 5)
        cout = w.shape[1]
        B = _build_shift_weights(w, pieces)
        rows_out = B.shape[1]
        ops[f"w{li}"] = jnp.asarray(_merge_shift_weights(B), dtype=mm_dtype)
        gcol = np.tile(np.asarray(blk["g"], np.float32), rows_out // cout).reshape(rows_out, 1)
        bcol = np.tile(np.asarray(blk["b"], np.float32), rows_out // cout).reshape(rows_out, 1)
        ops[f"g{li}"] = jnp.asarray(np.tile(gcol, (1, MCOLS)))               # pre-tiled (rows,128)
        ops[f"be{li}"] = jnp.asarray(np.tile(bcol, (1, MCOLS)))
        pieces = 2 * pieces

    B3 = _build_shift_weights(np.asarray(params["w_last"], np.float32), pieces)
    rows_out3 = B3.shape[1]
    ops["w3"] = jnp.asarray(_merge_shift_weights(B3), dtype=mm_dtype)        # (192, 1152)
    p3 = 2 * pieces
    bias = np.tile(np.asarray(params["b_last"], np.float32), p3 * p3).reshape(rows_out3, 1)
    ops["bias3"] = jnp.asarray(np.tile(bias, (1, MCOLS)))                    # (192, 128)
    mask8 = np.zeros((PADG, PADG), np.float32)
    mask8[HALO:HALO + FIRST_FM, HALO:HALO + FIRST_FM] = 1.0
    ops["mask"] = jnp.asarray(np.tile(mask8.reshape(1, PADG * PADG), (1, N_BATCH)))  # (1, 128)
    return ops


# ----------------------------- forward (jit-able) -----------------------------
def generator_forward(ops, z, *, roll_matches_jnp, c_a=None):
    inp_a = jnp.concatenate((z, c_a), axis=1) if CONDITIONAL else z
    assert inp_a.shape == (N_BATCH, Z_LEN), "kernel is packed for batch=2, z_len=16"

    # z broadcast to the base-grid columns (one tiny XLA op, the only pre-work).
    zcols = jnp.repeat(inp_a.T.astype(jnp.float32), COLS_PER_IMG, axis=1)    # (16, 128)

    operands = (zcols, ops["wlin"], ops["g0"], ops["b0"],
                ops["w1"], ops["g1"], ops["be1"],
                ops["w2"], ops["g2"], ops["be2"],
                ops["w3"], ops["bias3"], ops["mask"])
    rows_out = ops["w3"].shape[0]                                            # 192

    vmem = pl.BlockSpec(memory_space=pltpu.MemorySpace.VMEM)
    in_specs = [vmem] * len(operands)
    in_specs[7] = pl.BlockSpec(memory_space=pl.ANY)     # w2: manual prefetch
    in_specs[10] = pl.BlockSpec(memory_space=pl.ANY)    # w3: manual prefetch

    mm_elems = (ops["w1"].shape[0] * ops["w1"].shape[1]
                + ops["w2"].shape[0] * ops["w2"].shape[1]
                + ops["w3"].shape[0] * ops["w3"].shape[1])
    flops = 2 * mm_elems * MCOLS + 2 * Z_LEN * C0 * MCOLS
    transcendentals = rows_out * MCOLS + 8192
    bytes_accessed = (sum(int(o.size) * o.dtype.itemsize for o in operands)
                      + rows_out * MCOLS * 4)

    raw = pl.pallas_call(
        _make_kernel(_roll_amounts(roll_matches_jnp)),
        out_shape=jax.ShapeDtypeStruct((rows_out, MCOLS), jnp.float32),
        in_specs=in_specs,
        out_specs=vmem,
        scratch_shapes=[
            pltpu.VMEM(ops["w2"].shape, ops["w2"].dtype),
            pltpu.VMEM(ops["w3"].shape, ops["w3"].dtype),
            pltpu.SemaphoreType.DMA((2,)),
        ],
        cost_estimate=pl.CostEstimate(flops=flops,
                                      transcendentals=transcendentals,
                                      bytes_accessed=bytes_accessed),
        compiler_params=pltpu.CompilerParams(vmem_limit_bytes=32 * 1024 * 1024),
    )(*operands)

    # Single NCHW assembly at the very end (outside the kernel, on 96 KB).
    pfin = 2 ** (BLOCKS + 1)                                # 8 pieces / spatial dim
    t = raw.reshape(pfin, pfin, IMGCH, N_BATCH, PADG, PADG)
    t = t[:, :, :, :, HALO:HALO + FIRST_FM, HALO:HALO + FIRST_FM]   # (8,8,3,N,4,4)
    out_a = t.transpose(3, 2, 4, 0, 5, 1).reshape(N_BATCH, IMGCH,
                                                  FIRST_FM * pfin, FIRST_FM * pfin)
    return (out_a,)     # coupled=False -> single-element tuple, like the module


# ----------------------------- parameters ------------------------------------
def init_params(key):
    mult = 2 ** BLOCKS
    fc_out = G_DIM * mult * FIRST_FM * FIRST_FM
    params = {}
    key, k0 = jax.random.split(key)
    # nn.Linear stores (out, in); we store its transpose (in, out) for x @ W.
    params["w_lin"] = 0.02 * jax.random.normal(k0, (Z_LEN, fc_out), jnp.float32)
    params["bn0_g"] = jnp.ones((fc_out,), jnp.float32)
    params["bn0_b"] = jnp.zeros((fc_out,), jnp.float32)
    blocks = []
    for it in range(BLOCKS - 1, -1, -1):
        m = 2 ** it
        cin, cout = G_DIM * m * 2, G_DIM * m
        key, kw = jax.random.split(key)
        blocks.append({
            "w": 0.02 * jax.random.normal(kw, (cin, cout, K, K), jnp.float32),
            "g": jnp.ones((cout,), jnp.float32),
            "b": jnp.zeros((cout,), jnp.float32),
        })
    params["blocks"] = blocks
    key, kw = jax.random.split(key)
    params["w_last"] = 0.02 * jax.random.normal(kw, (G_DIM, IMGCH, K, K), jnp.float32)
    params["b_last"] = jnp.zeros((IMGCH,), jnp.float32)
    return params


# ---------------- pure-JAX reference (zero-insertion formulation) -------------
def _zero_insert(x, s=STRIDE):
    n, c, h, w = x.shape
    y = jnp.zeros((n, c, (h - 1) * s + 1, (w - 1) * s + 1), x.dtype)
    return y.at[:, :, ::s, ::s].set(x)


def _deconv_pad(x):
    lo = K - 1 - PAD
    hi = K - 1 - PAD + OUT_PAD
    return jnp.pad(x, ((0, 0), (0, 0), (lo, hi), (lo, hi)))


def _im2col(xp, k=K):
    n, c, hp, wp = xp.shape
    ho, wo = hp - k + 1, wp - k + 1
    cols = [xp[:, :, i:i + ho, j:j + wo] for i in range(k) for j in range(k)]
    p = jnp.stack(cols, axis=2).transpose(0, 3, 4, 1, 2)
    return p.reshape(n * ho * wo, c * k * k), (n, ho, wo)


def _deconv_w_to_mat(w):
    cin, cout, k, _ = w.shape
    return jnp.flip(w, axis=(2, 3)).transpose(0, 2, 3, 1).reshape(cin * k * k, cout)


def _bn_over_rows(acc, g, b):
    mean = jnp.mean(acc, axis=0, keepdims=True)
    var = jnp.mean(jnp.square(acc - mean), axis=0, keepdims=True)
    return (acc - mean) * jax.lax.rsqrt(var + BN_EPS) * g.reshape(1, -1) + b.reshape(1, -1)


def reference_forward(params, z, c_a=None):
    inp_a = jnp.concatenate((z, c_a), axis=1) if CONDITIONAL else z
    mult = 2 ** BLOCKS
    x = jnp.maximum(_bn_over_rows(inp_a @ params["w_lin"],
                                  params["bn0_g"], params["bn0_b"]), 0.0)
    x = x.reshape(-1, G_DIM * mult, FIRST_FM, FIRST_FM)
    for blk in params["blocks"]:
        patches, (n, ho, wo) = _im2col(_deconv_pad(_zero_insert(x)))
        y = jnp.maximum(_bn_over_rows(patches @ _deconv_w_to_mat(blk["w"]),
                                      blk["g"], blk["b"]), 0.0)
        x = y.reshape(n, ho, wo, -1).transpose(0, 3, 1, 2)
    patches, (n, ho, wo) = _im2col(_deconv_pad(_zero_insert(x)))
    y = jnp.tanh(patches @ _deconv_w_to_mat(params["w_last"])
                 + params["b_last"].reshape(1, -1))
    out_a = y.reshape(n, ho, wo, -1).transpose(0, 3, 1, 2)
    return (out_a,)


# ----------------------------- main ------------------------------------------
if __name__ == "__main__":
    key = jax.random.PRNGKey(0)
    key, kz = jax.random.split(key)
    params = init_params(key)
    z = jax.random.normal(kz, (N_BATCH, Z_LEN), jnp.float32)

    roll_matches_jnp = _probe_roll_convention()
    fwd = jax.jit(functools.partial(generator_forward,
                                    roll_matches_jnp=roll_matches_jnp))

    # (a) f32-weight build: tight check of the restructured kernel.
    ops_f32 = prepare_generator(params, mm_dtype=jnp.float32)
    (out_f32,) = fwd(ops_f32, z)
    # (b) bf16-weight build: the shipped fast path (native MXU dtype, ~half DMA).
    ops_bf16 = prepare_generator(params, mm_dtype=jnp.bfloat16)
    (out_a,) = fwd(ops_bf16, z)
    jax.block_until_ready((out_f32, out_a))

    expected_hw = FIRST_FM * (2 ** (BLOCKS + 1))  # 4 -> 8 -> 16 -> 32
    assert out_a.shape == (N_BATCH, IMGCH, expected_hw, expected_hw), out_a.shape
    assert bool(jnp.all(jnp.isfinite(out_a)))
    assert bool(jnp.all(jnp.abs(out_a) <= 1.0 + 1e-5))  # tanh range

    # correctness vs. the pure-JAX zero-insertion reference (full-precision dots)
    with jax.default_matmul_precision("highest"):
        (ref_a,) = jax.jit(reference_forward)(params, z)
    err_f32 = float(jnp.max(jnp.abs(out_f32 - ref_a)))
    err_bf16 = float(jnp.max(jnp.abs(out_a - ref_a)))
    # f32 tolerance leaves slack for the MXU's f32 emulation path; bf16 path is
    # looser by construction (weights + dot operands rounded to bf16).
    assert err_f32 < 1e-2, f"f32 kernel vs reference: max abs err = {err_f32}"
    assert err_bf16 < 5e-2, f"bf16 kernel vs reference: max abs err = {err_bf16}"

    print("KERNEL_OK")
</pallas_src>

<mosaic_0001>
module attributes {stable_mosaic.version = 11 : i64} {
  func.func @k(%arg0: memref<8x128xf32, #tpu.memory_space<vmem>>, %arg1: memref<8x128xf32, #tpu.memory_space<vmem>>) attributes {dimension_semantics = [], scalar_prefetch = 0 : i64, scratch_operands = 0 : i64, tpu.core_type = #tpu.core_type<tc>} {
    %c0 = arith.constant 0 : index
    %c0_0 = arith.constant 0 : index
    %0 = vector.load %arg0[%c0, %c0_0] : memref<8x128xf32, #tpu.memory_space<vmem>>, vector<8x128xf32>
    %c1_i32 = arith.constant 1 : i32
    %1 = tpu.dynamic_rotate %0 by %c1_i32 dim 1 : vector<8x128xf32>, i32 -> vector<8x128xf32>
    %c0_1 = arith.constant 0 : index
    %c0_2 = arith.constant 0 : index
    %2 = vector.load %arg1[%c0_1, %c0_2] : memref<8x128xf32, #tpu.memory_space<vmem>>, vector<8x128xf32>
    tpu.vector_store %arg1[%c0_1, %c0_2], %1 {strides = array<i32>} : memref<8x128xf32, #tpu.memory_space<vmem>>, vector<8x128xf32>,
    return
  }
}

</mosaic_0001>

<bundles_post_ra>
// kernel: tpu_custom_call.1
= control target key start
LH: loop header
LB: loop body
LE: loop exit
PB: predicated region body
PF: predicated region fallthrough
CT: control target
= control target key end

     0   :  { %6 = vsyncpa [#allocation3], 0  ;;  %s128_s0 = inlined_call_operand.hbm [shape: f32[8,128], index: 0, kind: input, shape index: {}]   ;;  %s129_s1 = inlined_call_operand.hbm [shape: f32[8,128], index: 1, kind: output, shape index: {}]  }
   0x1   :  { %7 = vsyncpa [#allocation4], 0  ;;  %s91_s6 = smov [#allocation2]   ;;  %s43_s10 = scalar_lea.hbm %s128_s0, 128 }
   0x2   :  { %s14_s7 = sshll.u32 %s91_s6, 4  ;;  %p44_p0 = scmp.ne.s32.totalorder %s128_s0, %s43_s10  ;;  %s15_s7 = int_to_ptr.vmem [resolvable:$true] %s14_s7 }
   0x3   :  { %p47_p1 = scmp.lt.u32.totalorder %s43_s10, %s128_s0 }
   0x5   :  { %p49_p2 = pnand %p47_p1, %p44_p0 }
   0x7   :  { %52 = shalt.err (!%p49_p2)
}
   0x8   :  { %s53_s15 = scalar_lea.vmem %s15_s7, 128  ;;  %p58_p4 = scmp.lt.s32.totalorder %s15_s7, %s15_s7 }
   0x9   :  { %p54_p3 = scmp.ne.s32.totalorder %s15_s7, %s53_s15  ;;  %p59_p5 = scmp.lt.s32.totalorder %s53_s15, %s53_s15 }
   0xb   :  { %p60_p6 = por %p59_p5, %p58_p4 }
   0xd   :  { %p61_p7 = pnand %p60_p6, %p54_p3 }
   0xf   :  { %64 = shalt.err (!%p61_p7)
}
  0x10   :  { %17 = dma.hbm_to_vmem [thread:$0]  %s128_s0, 128, %s15_s7, [#allocation3]  }
  0x11   :  { %87 = dma.done.wait [#allocation3], 128  }
  0x12   :  { %88 = vsyncadd [#allocation3], 4294967168  ;;  %v21_v0 = vld [vmem:[#allocation2] sm:$0xff]  ;;  %s92_s18 = smov 1   ;;  %s93_s19 = smov [#allocation5]  }
  0x13   :  { %22 = vrot.lane.b32.xlu0 %v21_v0, %s92_s18  ;;  %s31_s20 = sshll.u32 %s93_s19, 4  ;;  %s32_s20 = int_to_ptr.vmem [resolvable:$true] %s31_s20 }
  0x14   :  { %s65_s21 = scalar_lea.vmem %s32_s20, 128  ;;  %p70_p9 = scmp.lt.s32.totalorder %s32_s20, %s32_s20 }
  0x15   :  { %p66_p8 = scmp.ne.s32.totalorder %s32_s20, %s65_s21  ;;  %p71_p10 = scmp.lt.s32.totalorder %s65_s21, %s65_s21 }
  0x17   :  { %p72_p11 = por %p71_p10, %p70_p9 }
  0x19   :  { %p73_p12 = pnand %p72_p11, %p66_p8 }
  0x85   :  { %v23_v1 = vpop.permute.xlu0 %22 }
  0x86   :  { %24 = vst [vmem:[#allocation5] sm:$0xff] %v23_v1 }
  0x87   :  { %76 = shalt.err (!%p73_p12)
}
  0x88   :  { %s77_s0 = scalar_lea.hbm %s129_s1, 128 }
  0x89   :  { %p78_p13 = scmp.ne.s32.totalorder %s129_s1, %s77_s0  ;;  %p81_p0 = scmp.lt.u32.totalorder %s77_s0, %s129_s1 }
  0x8b   :  { %p83_p1 = pnand %p81_p0, %p78_p13 }
  0x8d   :  { %86 = shalt.err (!%p83_p1)
}
  0x8e   :  { %34 = dma.vmem_to_hbm [thread:$0]  %s32_s20, 128, %s129_s1, [#allocation4]  }
  0x8f   :  { %89 = dma.done.wait [#allocation4], 128  }
  0x90   :  { %90 = vsyncadd [#allocation4], 4294967168 }
  0x91   :  { %38 = vsyncpa [#allocation3], 1 }
  0x92   :  { %39 = vsyncpa [#allocation4], 1 }

</bundles_post_ra>
